<compile_context>
chip_gen: v7x
topology: tpu7x:2x2x1
jax: 0.10.0
libtpu: 0.0.40
codegen_flags: <defaults>
</compile_context>

<pallas_src>
import jax
import jax.numpy as jnp
from jax.experimental import pallas as pl
from jax.experimental.pallas import tpu as pltpu

_VMEM_LIMIT = 32 * 1024 * 1024  # explicit scoped-VMEM budget (safe on v5e/v6e/v7x)


def _spec(shape, index_map, *, buffers=None):
    """BlockSpec, optionally with an explicit pipeline buffer count.

    buffers=1 -> single-buffer grid-invariant operands (halves weight VMEM)
    buffers=3 -> deeper pipelining for the per-step gx stream of the recurrence
    Falls back to a plain BlockSpec on jax versions without pipeline_mode.
    """
    if buffers is not None and hasattr(pl, "Buffered"):
        try:
            return pl.BlockSpec(shape, index_map,
                                pipeline_mode=pl.Buffered(buffers))
        except TypeError:  # older jax: no pipeline_mode kwarg
            pass
    return pl.BlockSpec(shape, index_map)


# ---------------------------------------------------------------------------
# Kernel A: batched input-gate precompute   gx = x @ W_ih_all + b_ih_all
# grid = (T, batch_tiles), both parallel; gx written directly as (T, Bp, 3Hp)
# ---------------------------------------------------------------------------
def _input_gates_kernel(x_ref, w_ref, b_ref, gx_ref):
    gx_ref[0] = (
        jnp.dot(x_ref[0].astype(w_ref.dtype), w_ref[...],
                preferred_element_type=jnp.float32)
        + b_ref[...]
    ).astype(gx_ref.dtype)


# ---------------------------------------------------------------------------
# Kernel B: GRU recurrence.  grid = (batch_tiles [parallel], T [arbitrary]).
# One fused (BT,Hp)x(Hp,3Hp) matmul per step; gate math in f32; recurrent
# state lives in an f32 VMEM scratch; hs streamed out (optionally bf16).
# ---------------------------------------------------------------------------
def _gru_kernel(gx_ref, h0_ref, whh_ref, bhh_ref, hs_ref, hfin_ref, h_scratch):
    t = pl.program_id(1)
    Hp = h0_ref.shape[-1]

    @pl.when(t == 0)
    def _():
        h_scratch[...] = h0_ref[...]

    h = h_scratch[...]                                   # (BT, Hp) f32 state
    gx = gx_ref[0].astype(jnp.float32)                   # gate math stays f32

    gh = jnp.dot(h.astype(whh_ref.dtype), whh_ref[...],
                 preferred_element_type=jnp.float32) + bhh_ref[...]

    # PyTorch gate order: r, z, n
    i_r, i_z, i_n = gx[:, :Hp], gx[:, Hp:2 * Hp], gx[:, 2 * Hp:]
    h_r, h_z, h_n = gh[:, :Hp], gh[:, Hp:2 * Hp], gh[:, 2 * Hp:]

    r = jax.nn.sigmoid(i_r + h_r)
    z = jax.nn.sigmoid(i_z + h_z)
    n = jnp.tanh(i_n + r * h_n)
    h_new = n + z * (h - n)                              # == (1-z)*n + z*h

    h_scratch[...] = h_new
    hs_ref[0] = h_new.astype(hs_ref.dtype)

    @pl.when(t == pl.num_programs(1) - 1)
    def _():
        hfin_ref[...] = h_new


# ---------------------------------------------------------------------------
# Kernel C: FC+ReLU stack + output projection.  grid = (T, batch_tiles),
# both parallel, fed directly from the (T, Bp, Hp) hidden-state stream.
# ---------------------------------------------------------------------------
def _head_kernel(h_ref, fcw_ref, fcb_ref, outw_ref, outb_ref, out_ref):
    o = h_ref[0]
    for l in range(fcw_ref.shape[0]):                    # static unroll
        o = jnp.maximum(
            jnp.dot(o.astype(fcw_ref.dtype), fcw_ref[l],
                    preferred_element_type=jnp.float32) + fcb_ref[l],
            0.0)
    out_ref[0] = (
        jnp.dot(o.astype(outw_ref.dtype), outw_ref[...],
                preferred_element_type=jnp.float32)
        + outb_ref[...]
    ).astype(out_ref.dtype)


# ---------------------------------------------------------------------------
# Wrapper
# ---------------------------------------------------------------------------
def _round_up(x, m):
    return ((x + m - 1) // m) * m


def _pad_to(x, shape):
    pads = [(0, s - d) for d, s in zip(x.shape, shape)]
    if any(p[1] for p in pads):
        return jnp.pad(x, pads)
    return x


def _pad_gate_cols(w, H, Hp):
    """Pad each of the three H-wide gate column groups to Hp separately so the
    r/z/n slices stay at lane offsets 0, Hp, 2*Hp."""
    parts = [_pad_to(w[..., g * H:(g + 1) * H], w.shape[:-1] + (Hp,))
             for g in range(3)]
    return jnp.concatenate(parts, axis=-1)


def decoder_forward(params, x_idx, hidden, *, num_gru_layers=1,
                    matmul_dtype=jnp.float32, stream_dtype=None):
    """Forward pass of the PyTorch Decoder.

    x_idx:  (B, T) int32 token ids.  hidden: (num_gru_layers, B, H) or (B, H).
    matmul_dtype: dtype of MXU operands (weights / matmul inputs); f32 accum.
    stream_dtype: dtype of the big HBM intermediates gx / hs (defaults to
        matmul_dtype).  Gate / bias / ReLU math stays f32 regardless.
    """
    f32 = jnp.float32
    if stream_dtype is None:
        stream_dtype = matmul_dtype

    emb_table = params["embedding"]              # (n_categories, H)
    wih, whh = params["wih"], params["whh"]      # (Lg, H, 3H) fused, pre-T
    bih, bhh = params["bih"], params["bhh"]      # (Lg, 1, 3H)
    fcw, fcb = params["fcw"], params["fcb"]      # (L, H, H), (L, 1, H)
    outw, outb = params["outw"], params["outb"]  # (H, O), (1, O)

    if wih.shape[0] != num_gru_layers:
        raise ValueError("params carry %d GRU layer(s) but num_gru_layers=%d"
                         % (wih.shape[0], num_gru_layers))

    B, T = x_idx.shape
    H = emb_table.shape[1]
    O = outw.shape[1]
    L = fcw.shape[0]

    # hidden shape fixup (mirrors the PyTorch forward's unsqueeze/expand).
    if hidden.ndim == 2:
        hidden = jnp.broadcast_to(hidden[None], (num_gru_layers, B, H))
    elif hidden.shape[0] != num_gru_layers:
        hidden = jnp.broadcast_to(hidden[:1], (num_gru_layers, B, H))

    # ---- TPU tile padding: lanes (128) for H/O, sublanes (8) for B ----
    Hp = _round_up(H, 128)
    Op = _round_up(O, 128)
    Bp = _round_up(B, 8)
    BT = min(Bp, 256)                 # fat MXU M-dim (v6e/v7x 256-wide MXU)
    Bp = _round_up(Bp, BT)
    nb = Bp // BT
    # v7x megacore: give the serial recurrence >=2 parallel batch tiles when
    # the padded batch is large enough to split without breaking tiling.
    if nb == 1 and Bp >= 32 and (Bp // 2) % 16 == 0:
        BT = Bp // 2
        nb = 2

    wih_p = _pad_to(_pad_gate_cols(wih.astype(f32), H, Hp),
                    (num_gru_layers, Hp, 3 * Hp)).astype(matmul_dtype)
    whh_p = _pad_to(_pad_gate_cols(whh.astype(f32), H, Hp),
                    (num_gru_layers, Hp, 3 * Hp)).astype(matmul_dtype)
    bih_p = _pad_gate_cols(bih.astype(f32), H, Hp)           # (Lg,1,3Hp) f32
    bhh_p = _pad_gate_cols(bhh.astype(f32), H, Hp)           # (Lg,1,3Hp) f32
    emb_p = _pad_to(emb_table.astype(f32),
                    (emb_table.shape[0], Hp)).astype(matmul_dtype)
    fcw_p = _pad_to(fcw.astype(f32), (L, Hp, Hp)).astype(matmul_dtype)
    fcb_p = _pad_to(fcb.astype(f32), (L, 1, Hp))
    outw_p = _pad_to(outw.astype(f32), (Hp, Op)).astype(matmul_dtype)
    outb_p = _pad_to(outb.astype(f32), (1, Op))
    h0_p = _pad_to(hidden.astype(f32), (num_gru_layers, Bp, Hp))

    # Embedding lookup (XLA glue): directly time-major and in matmul_dtype —
    # no separate big transpose / padding pass over the activations.
    # TODO(synk): could be fused into Kernel A via scalar-prefetched token ids
    # + a pl.Element index_map on the embedding table; kept in XLA here.
    x_idx_p = _pad_to(x_idx, (Bp, T))                        # pad batch with id 0
    x_tm = jnp.take(emb_p, jnp.transpose(x_idx_p), axis=0)   # (T, Bp, Hp)

    cp_parallel = pltpu.CompilerParams(
        dimension_semantics=("parallel", "parallel"),
        vmem_limit_bytes=_VMEM_LIMIT)
    cp_recurrent = pltpu.CompilerParams(
        dimension_semantics=("parallel", "arbitrary"),
        vmem_limit_bytes=_VMEM_LIMIT)

    def input_gates(x_l, wih_l, bih_l):
        return pl.pallas_call(
            _input_gates_kernel,
            out_shape=jax.ShapeDtypeStruct((T, Bp, 3 * Hp), stream_dtype),
            grid_spec=pltpu.PrefetchScalarGridSpec(
                num_scalar_prefetch=0,
                grid=(T, nb),
                in_specs=[
                    _spec((1, BT, Hp), lambda t, b: (t, b, 0)),
                    _spec((Hp, 3 * Hp), lambda t, b: (0, 0), buffers=1),
                    _spec((1, 3 * Hp), lambda t, b: (0, 0), buffers=1),
                ],
                out_specs=_spec((1, BT, 3 * Hp), lambda t, b: (t, b, 0)),
            ),
            compiler_params=cp_parallel,
        )(x_l, wih_l, bih_l)

    def gru_layer(gx, h0_l, whh_l, bhh_l):
        # TODO(synk): for very long T, move the T loop inside the kernel
        # (grid=(nb,), emit_pipeline over gx chunks) so h stays in vregs.
        return pl.pallas_call(
            _gru_kernel,
            out_shape=(
                jax.ShapeDtypeStruct((T, Bp, Hp), stream_dtype),  # all h_t
                jax.ShapeDtypeStruct((Bp, Hp), f32),              # final h
            ),
            grid_spec=pltpu.PrefetchScalarGridSpec(
                num_scalar_prefetch=0,
                grid=(nb, T),
                in_specs=[
                    _spec((1, BT, 3 * Hp), lambda b, t: (t, b, 0), buffers=3),
                    _spec((BT, Hp), lambda b, t: (b, 0)),
                    _spec((Hp, 3 * Hp), lambda b, t: (0, 0), buffers=1),
                    _spec((1, 3 * Hp), lambda b, t: (0, 0), buffers=1),
                ],
                out_specs=[
                    _spec((1, BT, Hp), lambda b, t: (t, b, 0)),
                    _spec((BT, Hp), lambda b, t: (b, 0)),
                ],
                scratch_shapes=[pltpu.VMEM((BT, Hp), f32)],
            ),
            compiler_params=cp_recurrent,
        )(gx, h0_l, whh_l, bhh_l)

    def head(hs):
        return pl.pallas_call(
            _head_kernel,
            out_shape=jax.ShapeDtypeStruct((T, Bp, Op), f32),
            grid_spec=pltpu.PrefetchScalarGridSpec(
                num_scalar_prefetch=0,
                grid=(T, nb),
                in_specs=[
                    _spec((1, BT, Hp), lambda t, b: (t, b, 0)),
                    _spec((L, Hp, Hp), lambda t, b: (0, 0, 0), buffers=1),
                    _spec((L, 1, Hp), lambda t, b: (0, 0, 0), buffers=1),
                    _spec((Hp, Op), lambda t, b: (0, 0), buffers=1),
                    _spec((1, Op), lambda t, b: (0, 0), buffers=1),
                ],
                out_specs=_spec((1, BT, Op), lambda t, b: (t, b, 0)),
            ),
            compiler_params=cp_parallel,
        )(hs, fcw_p, fcb_p, outw_p, outb_p)

    # ---- stacked GRU: kernels A+B per layer (layer l feeds layer l+1) ----
    x_l = x_tm
    finals = []
    for layer in range(num_gru_layers):
        gx = input_gates(x_l, wih_p[layer], bih_p[layer])
        hs, h_fin = gru_layer(gx, h0_p[layer], whh_p[layer], bhh_p[layer])
        finals.append(h_fin)
        x_l = hs

    # ---- FC+ReLU stack + output projection on the last layer's states ----
    out = head(x_l)                                          # (T, Bp, Op) f32

    prediction = jnp.transpose(out[:, :B, :O], (1, 0, 2))    # (B, T, O)
    h_final = jnp.stack(finals)[:, :B, :H]                   # (Lg, B, H)
    return prediction, h_final


# ---------------------------------------------------------------------------
# Parameters (fused GRU weight layout) and pure-JAX reference
# ---------------------------------------------------------------------------
def init_params(key, hidden_dim, output_dim, n_categories,
                num_gru_layers=1, num_fc_layers=1):
    H, O, Lg, L = hidden_dim, output_dim, num_gru_layers, num_fc_layers
    ks = jax.random.split(key, 9)
    k = 1.0 / jnp.sqrt(H)
    u = lambda kk, shape: jax.random.uniform(kk, shape, jnp.float32, -k, k)
    return {
        "embedding": jax.random.normal(ks[0], (n_categories, H), jnp.float32),
        # GRU weights stored fused & pre-transposed so the kernels do x @ W:
        #   wih[l][:, g*H:(g+1)*H] == W_i{r,z,n}.T of layer l (PyTorch order)
        "wih": u(ks[1], (Lg, H, 3 * H)),
        "whh": u(ks[2], (Lg, H, 3 * H)),
        "bih": u(ks[3], (Lg, 1, 3 * H)),
        "bhh": u(ks[4], (Lg, 1, 3 * H)),
        "fcw": u(ks[5], (L, H, H)),
        "fcb": u(ks[6], (L, 1, H)),
        "outw": u(ks[7], (H, O)),
        "outb": u(ks[8], (1, O)),
    }


def _reference_forward(params, x_idx, hidden, num_gru_layers=1):
    """Pure-JAX reference mirroring torch.nn.GRU / Linear semantics."""
    emb = jnp.take(params["embedding"], x_idx, axis=0)       # (B, T, H)
    B, T, H = emb.shape
    if hidden.ndim == 2:
        hidden = jnp.broadcast_to(hidden[None], (num_gru_layers, B, H))
    elif hidden.shape[0] != num_gru_layers:
        hidden = jnp.broadcast_to(hidden[:1], (num_gru_layers, B, H))
    seq = emb
    finals = []
    for layer in range(num_gru_layers):
        wih, whh = params["wih"][layer], params["whh"][layer]
        bih, bhh = params["bih"][layer], params["bhh"][layer]
        h = hidden[layer]
        outs = []
        for t in range(T):
            x = seq[:, t, :]
            gi = x @ wih + bih
            gh = h @ whh + bhh
            i_r, i_z, i_n = gi[:, :H], gi[:, H:2 * H], gi[:, 2 * H:]
            h_r, h_z, h_n = gh[:, :H], gh[:, H:2 * H], gh[:, 2 * H:]
            r = jax.nn.sigmoid(i_r + h_r)
            z = jax.nn.sigmoid(i_z + h_z)
            n = jnp.tanh(i_n + r * h_n)
            h = (1.0 - z) * n + z * h
            outs.append(h)
        seq = jnp.stack(outs, axis=1)
        finals.append(h)
    out = seq
    for l in range(params["fcw"].shape[0]):
        out = jax.nn.relu(out @ params["fcw"][l] + params["fcb"][l])
    pred = out @ params["outw"] + params["outb"]
    return pred, jnp.stack(finals)


if __name__ == "__main__":
    hidden_dim = 32
    output_dim = 8
    n_categories = 16
    batch = 2
    seq_len = 8

    key = jax.random.PRNGKey(0)
    k_params, k_params2, k_x, k_h = jax.random.split(key, 4)

    x_idx = jax.random.randint(k_x, (batch, seq_len), 0, n_categories, jnp.int32)
    hidden0 = jax.random.normal(k_h, (batch, hidden_dim), jnp.float32)

    # --- single GRU layer, f32 path: strict check vs the pure-JAX reference ---
    params = init_params(k_params, hidden_dim, output_dim, n_categories,
                         num_gru_layers=1, num_fc_layers=1)
    pred, hid = decoder_forward(params, x_idx, hidden0, num_gru_layers=1)
    pred = jax.block_until_ready(pred)
    hid = jax.block_until_ready(hid)
    ref_pred, ref_hid = _reference_forward(params, x_idx, hidden0, 1)
    assert pred.shape == (batch, seq_len, output_dim)
    assert hid.shape == (1, batch, hidden_dim)
    assert jnp.allclose(pred, ref_pred, atol=1e-4, rtol=1e-4)
    assert jnp.allclose(hid, ref_hid, atol=1e-4, rtol=1e-4)

    # --- stacked GRU (2 layers, 2 FC layers), f32 path ---
    params2 = init_params(k_params2, hidden_dim, output_dim, n_categories,
                          num_gru_layers=2, num_fc_layers=2)
    pred2, hid2 = decoder_forward(params2, x_idx, hidden0, num_gru_layers=2)
    pred2 = jax.block_until_ready(pred2)
    hid2 = jax.block_until_ready(hid2)
    ref_pred2, ref_hid2 = _reference_forward(params2, x_idx, hidden0, 2)
    assert pred2.shape == (batch, seq_len, output_dim)
    assert hid2.shape == (2, batch, hidden_dim)
    assert jnp.allclose(pred2, ref_pred2, atol=1e-4, rtol=1e-4)
    assert jnp.allclose(hid2, ref_hid2, atol=1e-4, rtol=1e-4)

    # --- bf16 matmuls + bf16 gx/hs HBM streams (v5e/v6e MXU-native path) ---
    pred_bf, hid_bf = decoder_forward(params, x_idx, hidden0, num_gru_layers=1,
                                      matmul_dtype=jnp.bfloat16)
    pred_bf = jax.block_until_ready(pred_bf)
    jax.block_until_ready(hid_bf)
    assert pred_bf.shape == (batch, seq_len, output_dim)
    assert bool(jnp.all(jnp.isfinite(pred_bf)))
    assert float(jnp.max(jnp.abs(pred_bf - ref_pred))) < 0.2

    print("KERNEL_OK")
</pallas_src>

<mosaic_0001>
module attributes {stable_mosaic.version = 11 : i64} {
  func.func @_input_gates_kernel(%arg0: i32, %arg1: i32, %arg2: memref<1x8x128xf32, #tpu.memory_space<vmem>>, %arg3: memref<128x384xf32, #tpu.memory_space<vmem>>, %arg4: memref<1x384xf32, #tpu.memory_space<vmem>>, %arg5: memref<1x8x384xf32, #tpu.memory_space<vmem>>) attributes {dimension_semantics = [#tpu.dimension_semantics<parallel>, #tpu.dimension_semantics<parallel>], iteration_bounds = array<i64: 8, 1>, scalar_prefetch = 0 : i64, scratch_operands = 0 : i64, tpu.core_type = #tpu.core_type<tc>, window_params = [{transform_indices = @transform_0, window_bounds = array<i64: 1, 8, 128>}, {pipeline_mode = #tpu.pipeline_mode<synchronous>, transform_indices = @transform_1, window_bounds = array<i64: 128, 384>}, {pipeline_mode = #tpu.pipeline_mode<synchronous>, transform_indices = @transform_2, window_bounds = array<i64: 1, 384>}, {transform_indices = @transform_3, window_bounds = array<i64: 1, 8, 384>}]} {
    %c0 = arith.constant 0 : index
    %c0_0 = arith.constant 0 : index
    %c0_1 = arith.constant 0 : index
    %0 = vector.load %arg2[%c0, %c0_0, %c0_1] : memref<1x8x128xf32, #tpu.memory_space<vmem>>, vector<1x8x128xf32>
    %1 = vector.shape_cast %0 : vector<1x8x128xf32> to vector<8x128xf32>
    %c0_2 = arith.constant 0 : index
    %c0_3 = arith.constant 0 : index
    %2 = vector.load %arg3[%c0_2, %c0_3] : memref<128x384xf32, #tpu.memory_space<vmem>>, vector<128x384xf32>
    %cst = arith.constant dense<0.000000e+00> : vector<8x384xf32>
    %3 = tpu.matmul %1, %2, %cst {dimension_numbers = #tpu.dot_dimension_numbers<[1], [0], [0], [1], [0, 0, 1, 1], [], []>} : vector<8x128xf32>, vector<128x384xf32>, vector<8x384xf32> -> vector<8x384xf32>
    %c0_4 = arith.constant 0 : index
    %c0_5 = arith.constant 0 : index
    %4 = vector.load %arg4[%c0_4, %c0_5] : memref<1x384xf32, #tpu.memory_space<vmem>>, vector<1x384xf32>
    %5 = vector.broadcast %4 : vector<1x384xf32> to vector<8x384xf32>
    %6 = arith.addf %3, %5 : vector<8x384xf32>
    %c0_6 = arith.constant 0 : index
    %c0_7 = arith.constant 0 : index
    %c0_8 = arith.constant 0 : index
    %7 = vector.load %arg5[%c0_6, %c0_7, %c0_8] : memref<1x8x384xf32, #tpu.memory_space<vmem>>, vector<1x8x384xf32>
    %8 = vector.shape_cast %7 : vector<1x8x384xf32> to vector<8x384xf32>
    %9 = vector.shape_cast %6 : vector<8x384xf32> to vector<1x8x384xf32>
    tpu.vector_store %arg5[%c0_6, %c0_7, %c0_8], %9 {strides = array<i32>} : memref<1x8x384xf32, #tpu.memory_space<vmem>>, vector<1x8x384xf32>,
    return
  }
  func.func @transform_0(%arg0: i32, %arg1: i32) -> (i32, i32, i32) {
    %c0_i32 = arith.constant 0 : i32
    %c0_i32_0 = arith.constant 0 : i32
    return %arg0, %arg1, %c0_i32 : i32, i32, i32
  }
  func.func @transform_1(%arg0: i32, %arg1: i32) -> (i32, i32) {
    %c0_i32 = arith.constant 0 : i32
    %c0_i32_0 = arith.constant 0 : i32
    %c0_i32_1 = arith.constant 0 : i32
    return %c0_i32, %c0_i32_0 : i32, i32
  }
  func.func @transform_2(%arg0: i32, %arg1: i32) -> (i32, i32) {
    %c0_i32 = arith.constant 0 : i32
    %c0_i32_0 = arith.constant 0 : i32
    %c0_i32_1 = arith.constant 0 : i32
    return %c0_i32, %c0_i32_0 : i32, i32
  }
  func.func @transform_3(%arg0: i32, %arg1: i32) -> (i32, i32, i32) {
    %c0_i32 = arith.constant 0 : i32
    %c0_i32_0 = arith.constant 0 : i32
    return %arg0, %arg1, %c0_i32 : i32, i32, i32
  }
}

</mosaic_0001>

<bundles_post_ra>
// kernel: tpu_custom_call.1
= control target key start
LH: loop header
LB: loop body
LE: loop exit
PB: predicated region body
PF: predicated region fallthrough
CT: control target
= control target key end

     0   :  { %8 = vsyncpa [#allocation3], 0  ;;  %s1139_s0 = inlined_call_operand.hbm [shape: f32[8,8,128], index: 0, kind: input, shape index: {}]   ;;  %s1140_s1 = inlined_call_operand.hbm [shape: f32[128,384], index: 1, kind: input, shape index: {}]   ;;  %s1141_s2 = inlined_call_operand.vmem [shape: f32[1,384], index: 2, kind: input, shape index: {}]   ;;  %s1142_s3 = inlined_call_operand.hbm [shape: f32[8,8,384], index: 3, kind: output, shape index: {}]  }
   0x1   :  { %10 = vsyncpa [#allocation3 + $0x1], 0 }
   0x2   :  { %11 = vsyncpa [#allocation6], 0 }
   0x3   :  { %12 = vsyncpa [#allocation4], 0 }
   0x4   :  { %14 = vsyncpa [#allocation4 + $0x1], 0  ;;  %s912_s12 = smov 0   ;;  %s914_s13 = smov 0  }
   0x5   :  { %s916_s14 = smov 0   ;;  %s918_s15 = smov 0  }
   0x6   :  { %s920_s16 = smov 0   ;;  %s922_s17 = smov 0  }
   0x7 LB: > { %s537_s18 = sadd.s32 4294967295, %s882_s17   ;;  %s538_s19 = sadd.s32 4294967294, %s882_s17   ;;  %s882_s17 = sphi %s922_s17, %s20_s17   ;;  %s878_s16 = sphi %s920_s16, %s1165_s16   ;;  %s874_s15 = sphi %s918_s15, %s1164_s15   ;;  %s870_s14 = sphi %s916_s14, %s1163_s14   ;;  %s866_s13 = sphi %s914_s13, %s1162_s13   ;;  %s862_s12 = sphi %s912_s12, %s1161_s12  }
   0x8   : > { %p54_p0 = scmp.ne.s32.totalorder %s866_s13, %s862_s12  ;;  %p946_p1 = scmp.eq.s32.totalorder %s537_s18, 0 }
   0x9   : > { %p950_p2 = scmp.eq.s32.totalorder %s537_s18, 7  ;;  %p128_p3 = scmp.eq.s32.totalorder %s538_s19, 7 }
   0xa   : > { %s1147_s20 = scalar_select %p946_p1, 1, 0 }
   0xb   : > { %s1148_s21 = scalar_select %p950_p2, 1, 0 }
   0xc   : > { %p956_p4 = por %p946_p1, %p54_p0  ;;  %p539_p5 = scmp.ge.s32.totalorder %s882_s17, 1 }
   0xd   : > { %p961_p6 = por %p128_p3, %p54_p0  ;;  %p135_p7 = scmp.lt.s32.totalorder %s882_s17, 9 }
   0xe   : > { %s1149_s22 = scalar_select %p956_p4, 1, 0 }
   0xf   : > { %s1150_s23 = scalar_select %p961_p6, 1, 0 }
  0x10   : > { %p966_p8 = pnand %p539_p5, %p135_p7  ;;  %s884_s25 = smov [#allocation5]  }
  0x11   : > { %s147_s26 = sshll.u32 %s884_s25, 4  ;;  %s32_s28 = sadd.s32 1, %s878_s16  ;;  %s148_s26 = int_to_ptr.vmem [resolvable:$true] %s147_s26 }
  0x12   : > { %s1151_s24 = scalar_select %p966_p8, 1, 0 }
  0x13   : > { %p668_p9 = pneg %p966_p8  ;;  %s738_s4 = scalar_lea.hbm %s1140_s1, 6144 }
  0x14   : > { %p739_p11 = scmp.ne.s32.totalorder %s1140_s1, %s738_s4  ;;  %p745_p3 = scmp.lt.u32.totalorder %s738_s4, %s1140_s1 }
  0x15   : > { %p974_p10 = pnand %p668_p9, %p946_p1 }
  0x17   : > { %p740_p12 = pneg %p974_p10 }
  0x19   : > { %p741_p13 = pnand %p740_p12, %p739_p11 }
  0x1b   : > { %p742_p0 = pneg %p741_p13 }
  0x1d   : > { %p747_p5 = pnand %p745_p3, %p742_p0 }
  0x1f   : > { %750 = shalt.err (!%p747_p5)
}
  0x20   : > { %s751_s9 = scalar_lea.vmem %s148_s26, 6144  ;;  %p759_p1 = scmp.lt.s32.totalorder %s148_s26, %s148_s26 }
  0x21   : > { %p752_p7 = scmp.ne.s32.totalorder %s148_s26, %s751_s9  ;;  %p760_p4 = scmp.lt.s32.totalorder %s751_s9, %s751_s9 }
  0x23   : > { %p754_p9 = pnand %p752_p7, %p740_p12  ;;  %p761_p8 = por %p760_p4, %p759_p1 }
  0x25   : > { %p755_p6 = pneg %p754_p9 }
  0x27   : > { %p762_p2 = pnand %p761_p8, %p755_p6 }
  0x29   : > { %765 = shalt.err (!%p762_p2)
}
  0x2a   : > { %s885_s10 = smov 384   ;;  %s886_s11 = smov 24  }
  0x2b   : > { %671 = dma.hbm_to_vmem [thread:$0]  (!%p974_p10), %s1140_s1, 6144, %s148_s26, [#allocation6], %s885_s10, %s885_s10, %s886_s11  }
  0x2c   : > { %p34_p1 = scmp.ge.s32.totalorder %s32_s28, 8  ;;  %s41_s25 = sadd.s32 1, %s870_s14 }
  0x2d   : > { %p48_p2 = scmp.ne.s32.totalorder %s870_s14, %s866_s13  ;;  %p49_p4 = scmp.eq.s32.totalorder %s882_s17, 0 }
  0x2e   : > { %s1167_s28 = smov (%p34_p1, %s32_s28), 0  ;;  %p1154_p8 = scmp.ne.s32.totalorder %s1148_s21, 0 }
  0x2f   : > { %p1001_p6 = por %p49_p4, %p48_p2  ;;  %s36_s27 = ssub.s32 %s878_s16, %s1167_s28 }
  0x30   : > { %p1007_p11 = por %p1154_p8, %p48_p2  ;;  %p681_p12 = scmp.lt.s32.totalorder %s882_s17, 8 }
  0x31   : > { %p39_p10 = scmp.eq.s32.totalorder %s36_s27, 0  ;;  %s164_s26 = sand.u32 1, %s870_s14  }
  0x32   : > { %s542_s4 = sshll.u32 %s164_s26, 3  ;;  %s543_s6 = sshll.u32 %s878_s16, 7 }
  0x33   : > { %s1016_s5 = scalar_select %p39_p10, %s870_s14, %s41_s25  }
  0x34   : > { %s1022_s9 = scalar_lea.hbm %s1139_s0, %s543_s6  ;;  %s168_s21 = scalar_lea.vmem [#allocation2], %s542_s4 }
  0x35   : > { %s176_s10 = sshll.u32 %s168_s21, 4  ;;  %p1028_p13 = pnand %p681_p12, %p1001_p6  ;;  %s1024_s10 = int_to_ptr.vmem [resolvable:$true] %s176_s10 }
  0x36   : > { %s165_s18 = scalar_lea.sflag [#allocation3], %s164_s26  ;;  %s766_s19 = scalar_lea.hbm %s1022_s9, 128 }
  0x37   : > { %p767_p0 = scmp.ne.s32.totalorder %s1022_s9, %s766_s19  ;;  %p768_p3 = pneg %p1028_p13 }
  0x38   : > { %s771_s4 = scalar_lea.hbm %s1139_s0, 1024  ;;  %p772_p9 = scmp.lt.u32.totalorder %s1022_s9, %s1139_s0 }
  0x39   : > { %p769_p5 = pnand %p768_p3, %p767_p0  ;;  %p773_p1 = scmp.lt.u32.totalorder %s771_s4, %s766_s19 }
  0x3a   : > { %p775_p4 = scmp.lt.u32.totalorder %s766_s19, %s1022_s9 }
  0x3b   : > { %p770_p7 = pneg %p769_p5  ;;  %p774_p2 = por %p773_p1, %p772_p9 }
  0x3d   : > { %p776_p6 = por %p775_p4, %p774_p2 }
  0x3f   : > { %p777_p8 = pnand %p776_p6, %p770_p7 }
  0x41   : > { %780 = shalt.err (!%p777_p8)
}
  0x42   : > { %s781_s26 = scalar_lea.vmem %s1024_s10, 128  ;;  %s887_s7 = smov [#allocation2]  }
  0x43   : > { %p782_p12 = scmp.ne.s32.totalorder %s1024_s10, %s781_s26  ;;  %s786_s8 = sshll.u32 %s887_s7, 4  ;;  %s787_s8 = int_to_ptr.vmem [resolvable:$false] %s786_s8 }
  0x44   : > { %s788_s21 = scalar_lea.vmem %s787_s8, 256  ;;  %p789_p5 = scmp.lt.s32.totalorder %s1024_s10, %s787_s8 }
  0x45   : > { %p784_p10 = pnand %p782_p12, %p768_p3  ;;  %p790_p9 = scmp.lt.s32.totalorder %s788_s21, %s781_s26 }
  0x47   : > { %p785_p0 = pneg %p784_p10  ;;  %p791_p1 = por %p790_p9, %p789_p5 }
  0x49   : > { %p792_p2 = pnand %p791_p1, %p785_p0 }
  0x4b   : > { %795 = shalt.err (!%p792_p2)
}
  0x4c   : > { %675 = dma.hbm_to_vmem [thread:$0]  (!%p1028_p13), %s1022_s9, 128, %s1024_s10, %s165_s18  }
  0x4d   : > { %p1157_p7 = scmp.ne.s32.totalorder %s1151_s24, 0 }
  0x4e   : > { %s1060_s19 = sand.u32 (!%p1157_p7), 1, %s866_s13   ;;  %p1158_p3 = scmp.ne.s32.totalorder (!%p1157_p7), %s1149_s22, 0 }
  0x4f   : > { %185 = sbr.rel (%p1157_p7) target bundleno = 355 (0x163), region = 32  ;;  %s545_s25 = sshll.u32 (!%p1157_p7), %s1060_s19, 3 }
  0x50   : > { %s188_s27 = scalar_lea.sflag (!%p1157_p7), [#allocation3], %s1060_s19  ;;  %s1064_s4 = scalar_lea.vmem (!%p1157_p7), [#allocation2], %s545_s25 }
  0x56   : > { %849 = dma.done.wait (%p1158_p3), %s188_s27, 128  }
  0x57   : > { %851 = vsyncadd (%p1158_p3), %s188_s27, 4294967168  ;;  %p1159_p13 = scmp.ne.s32.totalorder %s1147_s20, 0 }
  0x59   : > { %853 = dma.done.wait (%p1159_p13), [#allocation6], 6144  }
  0x5a   : > { %855 = vsyncadd (%p1159_p13), [#allocation6], 4294961152  ;;  %v888_v0 = vmov 0.0|0.0   ;;  %v889_v1 = vmov 0.0   ;;  %vm890_vm0 = vmmov 0   ;;  %v220_v2 = vld [vmem:[#allocation5 + $0x8] sm:$0xff] }
  0x5b   : > { %634 = vmatprep.subr.bf16.mxu1 %v888_v0  ;;  %348 = vmatprep.mubr.f32.mxu0 %v889_v1  ;;  %v223_v3 = vld [vmem:[#allocation5 + $0x20] sm:$0xff]  ;;  %v222_v6 = vld [vmem:[#allocation5 + $0x18] sm:$0xff]  ;;  %v221_v7 = vld [vmem:[#allocation5 + $0x10] sm:$0xff]  ;;  %s658_s20 = smul.u32 24, %s1060_s19  ;;  %s891_s7 = smov [#allocation7]  }
  0x5c   : > { %599 = vmatprep.mubr.msk.f32.mxu1 %vm890_vm0, %v889_v1  ;;  %v219_v4 = vld [vmem:[#allocation5] sm:$0xff]  ;;  %v602_v5 = vpack.c.bf16 %v223_v3, %v220_v2  ;;  %v224_v8 = vld [vmem:[#allocation5 + $0x28] sm:$0xff]  ;;  %v226_v11 = vld [vmem:[#allocation5 + $0x38] sm:$0xff]  ;;  %s659_s9 = smul.u32 384, %s874_s15  ;;  %s429_s15 = scalar_lea.sflag [#allocation4], %s1060_s19 }
  0x5d   : > { %v604_v9 = vpack.c.bf16 %v222_v6, %v219_v4  ;;  %v635_v10 = vpack.c.bf16 %v224_v8, %v221_v7  ;;  %v229_v12 = vld [vmem:[#allocation5 + $0x50] sm:$0xff]  ;;  %v228_v15 = vld [vmem:[#allocation5 + $0x48] sm:$0xff]  ;;  %v227_v16 = vld [vmem:[#allocation5 + $0x40] sm:$0xff]  ;;  %s217_s10 = scalar_lea.vmem [#allocation7], %s658_s20  ;;  %s800_s8 = sshll.u32 %s891_s7, 4  ;;  %s801_s8 = int_to_ptr.vmem [resolvable:$false] %s800_s8 }
  0x5e   : > { %v225_v13 = vld [vmem:[#allocation5 + $0x30] sm:$0xff]  ;;  %603 = vmatprep.subr.bf16.mxu0 %v602_v5  ;;  %v606_v14 = vpack.c.bf16 %v229_v12, %v226_v11  ;;  %v230_v17 = vld [vmem:[#allocation5 + $0x58] sm:$0xff]  ;;  %v232_v20 = vld [vmem:[#allocation5 + $0x68] sm:$0xff]  ;;  %v269_v12 = vlaneseq  ;;  %s445_s11 = sshll.u32 %s217_s10, 4  ;;  %s1091_s6 = scalar_lea.hbm %s1142_s3, %s659_s9  ;;  %s1093_s11 = int_to_ptr.vmem [resolvable:$true] %s445_s11 }
  0x5f   : > { %605 = vmatpush1.bf16.msra.mxu0 %v604_v9  ;;  %636 = vmatpush3.bf16.msra.mxu1 %v635_v10  ;;  %v608_v18 = vpack.c.bf16 %v228_v15, %v225_v13  ;;  %v638_v19 = vpack.c.bf16 %v230_v17, %v227_v16  ;;  %v235_v21 = vld [vmem:[#allocation5 + $0x80] sm:$0xff]  ;;  %v234_v24 = vld [vmem:[#allocation5 + $0x78] sm:$0xff]  ;;  %v233_v25 = vld [vmem:[#allocation5 + $0x70] sm:$0xff]  ;;  %s796_s26 = scalar_lea.vmem %s1093_s11, 384  ;;  %s802_s21 = scalar_lea.vmem %s801_s8, 768 }
  0x60   : > { %v231_v22 = vld [vmem:[#allocation5 + $0x60] sm:$0xff]  ;;  %607 = vmatprep.subr.bf16.mxu0 %v606_v14  ;;  %637 = vmatprep.subr.bf16.mxu1 %v888_v0  ;;  %v610_v23 = vpack.c.bf16 %v235_v21, %v232_v20  ;;  %v236_v26 = vld [vmem:[#allocation5 + $0x88] sm:$0xff]  ;;  %v238_v27 = vld [vmem:[#allocation5 + $0x98] sm:$0xff]  ;;  %v270_v13 = vshrl.u32 %v269_v12, 7  ;;  %p797_p4 = scmp.ne.s32.totalorder %s1093_s11, %s796_s26  ;;  %p803_p12 = scmp.lt.s32.totalorder %s1093_s11, %s801_s8 }
  0x61   : > { %v241_v28 = vld [vmem:[#allocation5 + $0xb0] sm:$0xff]  ;;  %v612_v29 = vpack.c.bf16 %v234_v24, %v231_v22  ;;  %v641_v30 = vpack.c.bf16 %v236_v26, %v233_v25  ;;  %v240_v33 = vld [vmem:[#allocation5 + $0xa8] sm:$0xff]  ;;  %v239_v34 = vld [vmem:[#allocation5 + $0xa0] sm:$0xff]  ;;  %p804_p10 = scmp.lt.s32.totalorder %s802_s21, %s796_s26 }
  0x62   : > { %v237_v31 = vld [vmem:[#allocation5 + $0x90] sm:$0xff]  ;;  %v614_v32 = vpack.c.bf16 %v241_v28, %v238_v27  ;;  %v242_v35 = vld [vmem:[#allocation5 + $0xb8] sm:$0xff]  ;;  %v244_v36 = vld [vmem:[#allocation5 + $0xc8] sm:$0xff]  ;;  %v271_v14 = vsub.s32 0, %v270_v13  ;;  %v279_v15 = vsub.s32 2, %v270_v13  ;;  %v275_v17 = vsub.s32 1, %v270_v13  ;;  %p798_p6 = pnand %p797_p4, %p1007_p11 }
  0x63   : > { %609 = vmatpush1.bf16.msra.mxu0 %v608_v18  ;;  %639 = vmatpush3.bf16.msra.mxu1 %v638_v19  ;;  %v247_v37 = vld [vmem:[#allocation5 + $0xe0] sm:$0xff]  ;;  %v616_v38 = vpack.c.bf16 %v240_v33, %v237_v31  ;;  %v644_v39 = vpack.c.bf16 %v242_v35, %v239_v34  ;;  %v246_v42 = vld [vmem:[#allocation5 + $0xd8] sm:$0xff]  ;;  %v245_v43 = vld [vmem:[#allocation5 + $0xd0] sm:$0xff]  ;;  %p805_p0 = por %p804_p10, %p803_p12 }
  0x64   : > { %611 = vmatprep.subr.bf16.mxu0 %v610_v23  ;;  %640 = vmatprep.subr.bf16.mxu1 %v888_v0  ;;  %v243_v40 = vld [vmem:[#allocation5 + $0xc0] sm:$0xff]  ;;  %v618_v41 = vpack.c.bf16 %v247_v37, %v244_v36  ;;  %v248_v44 = vld [vmem:[#allocation5 + $0xe8] sm:$0xff]  ;;  %v250_v45 = vld [vmem:[#allocation5 + $0xf8] sm:$0xff]  ;;  %p799_p8 = pneg %p798_p6 }
  0x65   : > { %v253_v46 = vld [vmem:[#allocation5 + $0x110] sm:$0xff]  ;;  %v620_v47 = vpack.c.bf16 %v246_v42, %v243_v40  ;;  %v647_v48 = vpack.c.bf16 %v248_v44, %v245_v43  ;;  %v252_v51 = vld [vmem:[#allocation5 + $0x108] sm:$0xff]  ;;  %v251_v52 = vld [vmem:[#allocation5 + $0x100] sm:$0xff] }
  0x66   : > { %v249_v49 = vld [vmem:[#allocation5 + $0xf0] sm:$0xff]  ;;  %v622_v50 = vpack.c.bf16 %v253_v46, %v250_v45  ;;  %v254_v53 = vld [vmem:[#allocation5 + $0x118] sm:$0xff]  ;;  %v256_v54 = vld [vmem:[#allocation5 + $0x128] sm:$0xff]  ;;  %p806_p5 = pnand %p805_p0, %p799_p8 }
  0x67   : > { %613 = vmatpush1.bf16.msra.mxu0 %v612_v29  ;;  %642 = vmatpush3.bf16.msra.mxu1 %v641_v30  ;;  %v259_v55 = vld [vmem:[#allocation5 + $0x140] sm:$0xff]  ;;  %v624_v56 = vpack.c.bf16 %v252_v51, %v249_v49  ;;  %v650_v57 = vpack.c.bf16 %v254_v53, %v251_v52  ;;  %v258_v60 = vld [vmem:[#allocation5 + $0x138] sm:$0xff]  ;;  %v257_v61 = vld [vmem:[#allocation5 + $0x130] sm:$0xff] }
  0x68   : > { %615 = vmatprep.subr.bf16.mxu0 %v614_v32  ;;  %643 = vmatprep.subr.bf16.mxu1 %v888_v0  ;;  %v255_v58 = vld [vmem:[#allocation5 + $0x120] sm:$0xff]  ;;  %v626_v59 = vpack.c.bf16 %v259_v55, %v256_v54  ;;  %v260_v62 = vld [vmem:[#allocation5 + $0x148] sm:$0xff]  ;;  %v262_v63 = vld [vmem:[#allocation5 + $0x158] sm:$0xff] }
  0x69   : > { %v265_v1 = vld [vmem:[#allocation5 + $0x170] sm:$0xff]  ;;  %v628_v2 = vpack.c.bf16 %v258_v60, %v255_v58  ;;  %v653_v3 = vpack.c.bf16 %v260_v62, %v257_v61  ;;  %v264_v6 = vld [vmem:[#allocation5 + $0x168] sm:$0xff]  ;;  %v263_v7 = vld [vmem:[#allocation5 + $0x160] sm:$0xff] }
  0x6a   : > { %v261_v4 = vld [vmem:[#allocation5 + $0x150] sm:$0xff]  ;;  %v630_v5 = vpack.c.bf16 %v265_v1, %v262_v63  ;;  %v266_v8 = vld [vmem:[#allocation5 + $0x178] sm:$0xff] }
  0x6b   : > { %617 = vmatpush1.bf16.msra.mxu0 %v616_v38  ;;  %645 = vmatpush3.bf16.msra.mxu1 %v644_v39  ;;  %v632_v9 = vpack.c.bf16 %v264_v6, %v261_v4  ;;  %v656_v10 = vpack.c.bf16 %v266_v8, %v263_v7  ;;  %v218_v11 = vld [vmem:[%s1064_s4] sm:$0xff] }
  0x6c   : > { %619 = vmatprep.subr.bf16.mxu0 %v618_v41  ;;  %646 = vmatprep.subr.bf16.mxu1 %v888_v0  ;;  %v267_v16 = vld [vmem:[%s1141_s2] sm:$0x7] }
  0x6d   : > { %v272_v18 = vrot.slane %v267_v16, %v271_v14  ;;  %v280_v19 = vrot.slane %v267_v16, %v279_v15  ;;  %v276_v20 = vrot.slane %v267_v16, %v275_v17 }
  0x6f   : > { %621 = vmatpush1.bf16.msra.mxu0 %v620_v47  ;;  %648 = vmatpush3.bf16.msra.mxu1 %v647_v48 }
  0x70   : > { %623 = vmatprep.subr.bf16.mxu0 %v622_v50  ;;  %649 = vmatprep.subr.bf16.mxu1 %v888_v0 }
  0x73   : > { %625 = vmatpush1.bf16.msra.mxu0 %v624_v56  ;;  %651 = vmatpush3.bf16.msra.mxu1 %v650_v57 }
  0x74   : > { %627 = vmatprep.subr.bf16.mxu0 %v626_v59  ;;  %652 = vmatprep.subr.bf16.mxu1 %v888_v0 }
  0x77   : > { %629 = vmatpush1.bf16.msra.mxu0 %v628_v2  ;;  %654 = vmatpush3.bf16.msra.mxu1 %v653_v3 }
  0x78   : > { %631 = vmatprep.subr.bf16.mxu0 %v630_v5  ;;  %655 = vmatprep.subr.bf16.mxu1 %v888_v0 }
  0x7b   : > { %633 = vmatpush1.bf16.msra.mxu0 %v632_v9  ;;  %657 = vmatpush3.bf16.msra.mxu1 %v656_v10 }
  0x7e   : > { %349 = vmatmul.mubr.f32.vlgmr.msra.gmra.mrb[0].mxu0 %v218_v11  ;;  %600 = vmatmul.mubr.f32.vlgmr.msra.gmra.mrb[0].mxu1 %v218_v11 }
 0x151   : > { %v350_v0 = vpop.f32.mrb[0].mxu0  ;;  %v421_v21 = vpop.f32.mrb[0].mxu1 }
 0x152   : > { %v351_v22 = vadd.f32 %v350_v0, %v272_v18  ;;  %v422_v23 = vadd.f32 %v421_v21, %v280_v19  ;;  %v352_v24 = vpop.f32.mrb[1].mxu0  ;;  %v601_v25 = vpop.f32.mrb[1].mxu1 }
 0x153   : > { %v353_v26 = vadd.f32 %v352_v24, %v276_v20 }
 0x154   : > { %425 = vst [vmem:[%s217_s10] sm:$0xff] %v351_v22  ;;  %427 = vst [vmem:[%s217_s10 + $0x10] sm:$0xff] %v422_v23 }
 0x155   : > { %426 = vst [vmem:[%s217_s10 + $0x8] sm:$0xff] %v353_v26 }
 0x156   : > { %809 = shalt.err (!%p806_p5)
}
 0x157   : > { %s810_s19 = scalar_lea.hbm %s1091_s6, 384  ;;  %s814_s4 = scalar_lea.hbm %s1142_s3, 3072 }
 0x158   : > { %p811_p9 = scmp.ne.s32.totalorder %s1091_s6, %s810_s19  ;;  %p815_p7 = scmp.lt.u32.totalorder %s1091_s6, %s1142_s3 }
 0x159   : > { %p816_p3 = scmp.lt.u32.totalorder %s814_s4, %s810_s19  ;;  %p818_p4 = scmp.lt.u32.totalorder %s810_s19, %s1091_s6 }
 0x15a   : > { %p812_p1 = pnand %p811_p9, %p1007_p11 }
 0x15b   : > { %p817_p13 = por %p816_p3, %p815_p7 }
 0x15c   : > { %p813_p2 = pneg %p812_p1 }
 0x15d   : > { %p819_p6 = por %p818_p4, %p817_p13 }
 0x15f   : > { %p820_p8 = pnand %p819_p6, %p813_p2 }
 0x161   : > { %823 = shalt.err (!%p820_p8)
}
 0x162   : > { %666 = dma.vmem_to_hbm [thread:$0]  (%p1007_p11), %s1093_s11, 384, %s1091_s6, %s429_s15  }
 0x163 PF: > { %p683_p12 = scmp.ge.s32.totalorder %s882_s17, 2  ;;  %s457_s24 = sand.u32 1, %s862_s12  }
 0x164   : > { %p1160_p10 = scmp.ne.s32.totalorder %s1150_s23, 0  ;;  %s458_s9 = scalar_lea.sflag [#allocation4], %s457_s24 }
 0x166   : > { %p677_p0 = pnand %p683_p12, %p1160_p10 }
 0x168   : > { %857 = dma.done.wait (!%p677_p0), %s458_s9, 384  }
 0x169   : > { %859 = vsyncadd (!%p677_p0), %s458_s9, 4294966912  ;;  %s20_s17 = sadd.s32 1, %s882_s17   ;;  %s1161_s12 = smov %s866_s13 }
 0x16a   : > { %p17_p5 = scmp.ge.s32.totalorder %s20_s17, 10   ;;  %s1162_s13 = smov %s870_s14 }
 0x16b   : > { %s1163_s14 = smov %s1016_s5  ;;  %s1164_s15 = smov %s878_s16 }
 0x16c   : > { %s1165_s16 = smov %s1167_s28  ;;  %19 = sbr.rel (!%p17_p5) target bundleno = 7 (0x7), region = 81 }
 0x173   :  { %463 = vsyncpa [#allocation3], 1 }
 0x174   :  { %465 = vsyncpa [#allocation3 + $0x1], 1 }
 0x175   :  { %466 = vsyncpa [#allocation6], 1 }
 0x176   :  { %467 = vsyncpa [#allocation4], 1 }
 0x177   :  { %469 = vsyncpa [#allocation4 + $0x1], 1 }

</bundles_post_ra>
